<compile_context>
chip_gen: v6e
topology: v6e:2x2x1
jax: 0.10.0
libtpu: 0.0.40
codegen_flags: <defaults>
</compile_context>

<pallas_src>
import jax
import jax.numpy as jnp
from jax.experimental import pallas as pl
from jax.experimental.pallas import tpu as pltpu

EPS = 1e-5


def advanced_model_kernel(
    x_ref,
    w1_ref, b1_ref,
    w2_ref, b2_ref,
    w3_ref, b3_ref,
    w4_ref, b4_ref,
    w5r_ref, b5_ref,
    o_ref,
):
    x = x_ref[...]
    # TODO(synk): Dropout layers are identity here (inference mode).
    h = jnp.maximum(
        jnp.dot(x, w1_ref[...], preferred_element_type=jnp.float32) + b1_ref[...], 0.0)
    h = jnp.maximum(
        jnp.dot(h, w2_ref[...], preferred_element_type=jnp.float32) + b2_ref[...], 0.0)
    h = jnp.maximum(
        jnp.dot(h, w3_ref[...], preferred_element_type=jnp.float32) + b3_ref[...], 0.0)
    h = jnp.maximum(
        jnp.dot(h, w4_ref[...], preferred_element_type=jnp.float32) + b4_ref[...], 0.0)
    # Final layer, produced lane-dense: (1,16) contracted with (TILE_B,16) on the last
    # dims (A @ B^T) -> (1, TILE_B) row, stored directly without masked 1-lane writes.
    logits = jax.lax.dot_general(
        w5r_ref[...], h, (((1,), (1,)), ((), ())),
        preferred_element_type=jnp.float32) + b5_ref[...]
    o_ref[...] = jax.nn.sigmoid(logits)


def _fold_bn(w, b, bn):
    """Fold inference-mode BatchNorm1d into the preceding Linear (W', b')."""
    gamma, beta, mean, var = bn[0], bn[1], bn[2], bn[3]
    scale = gamma * jax.lax.rsqrt(var + EPS)          # (C,)
    w_f = w * scale[None, :]
    b_f = (b - mean[None, :]) * scale[None, :] + beta[None, :]
    return w_f, b_f


def advanced_model_pallas(x, params, tile_b=512):
    (w1, b1, bn1, w2, b2, bn2, w3, b3, bn3, w4, b4, bn4, w5, b5) = params
    w1f, b1f = _fold_bn(w1, b1, bn1)
    w2f, b2f = _fold_bn(w2, b2, bn2)
    w3f, b3f = _fold_bn(w3, b3, bn3)
    w4f, b4f = _fold_bn(w4, b4, bn4)
    w5_row = jnp.transpose(w5)                         # (1, 16): trans-RHS in-kernel
    folded = (w1f, b1f, w2f, b2f, w3f, b3f, w4f, b4f, w5_row, b5)

    B, F = x.shape
    tb = B if B <= tile_b else tile_b                  # small B: one full block
    n_tiles = pl.cdiv(B, tb)

    x_spec = pl.BlockSpec((tb, F), lambda i: (i, 0))
    # Parameters: full-array blocks with constant index maps -> VMEM-resident across
    # all grid steps.
    param_specs = [pl.BlockSpec(p.shape, lambda i: (0, 0)) for p in folded]
    out_spec = pl.BlockSpec((1, tb), lambda i: (i, 0))

    flops = 2 * B * (F * 32 + 32 * 64 + 64 * 32 + 32 * 16 + 16 * 1)
    param_bytes = sum(int(p.size) * 4 for p in folded)
    cost = pl.CostEstimate(
        flops=flops,
        transcendentals=B,                              # final sigmoid
        bytes_accessed=4 * B * F + 4 * B + param_bytes,
    )

    out2d = pl.pallas_call(
        advanced_model_kernel,
        out_shape=jax.ShapeDtypeStruct((n_tiles, tb), jnp.float32),
        grid=(n_tiles,),
        in_specs=[x_spec] + param_specs,
        out_specs=out_spec,
        compiler_params=pltpu.CompilerParams(
            dimension_semantics=("parallel",),
        ),
        cost_estimate=cost,
    )(x, *folded)

    # (n_tiles, tb) row-major flatten puts batch element j at flat index j.
    return out2d.reshape(-1)[:B].reshape(B, 1)


def advanced_model_ref(x, params):
    """Pure-JAX reference with explicit (unfolded) BatchNorm, matching PyTorch eval()."""
    (w1, b1, bn1, w2, b2, bn2, w3, b3, bn3, w4, b4, bn4, w5, b5) = params

    def bn_relu(h, bn):
        g, be, m, v = bn[0:1], bn[1:2], bn[2:3], bn[3:4]
        return jnp.maximum((h - m) * jax.lax.rsqrt(v + EPS) * g + be, 0.0)

    h = bn_relu(x @ w1 + b1, bn1)
    h = bn_relu(h @ w2 + b2, bn2)
    h = bn_relu(h @ w3 + b3, bn3)
    h = bn_relu(h @ w4 + b4, bn4)
    return jax.nn.sigmoid(h @ w5 + b5)


def init_params(key, input_size=15):
    dims = [(input_size, 32), (32, 64), (64, 32), (32, 16), (16, 1)]
    params = []
    for i, (fan_in, fan_out) in enumerate(dims):
        key, kw, kb = jax.random.split(key, 3)
        bound = 1.0 / jnp.sqrt(float(fan_in))
        w = jax.random.uniform(kw, (fan_in, fan_out), jnp.float32, -bound, bound)
        b = jax.random.uniform(kb, (1, fan_out), jnp.float32, -bound, bound)
        params.extend([w, b])
        if i < 4:  # BatchNorm1d after every Linear except the last one
            bn = jnp.stack([
                jnp.ones((fan_out,), jnp.float32),   # gamma
                jnp.zeros((fan_out,), jnp.float32),  # beta
                jnp.zeros((fan_out,), jnp.float32),  # running_mean
                jnp.ones((fan_out,), jnp.float32),   # running_var
            ], axis=0)
            params.append(bn)
    return params


if __name__ == "__main__":
    key = jax.random.PRNGKey(0)
    key, kx = jax.random.split(key)

    B, F = 8, 15
    x = jax.random.normal(kx, (B, F), jnp.float32)
    params = init_params(key, input_size=F)

    out = advanced_model_pallas(x, params)
    out = jax.block_until_ready(out)

    ref = advanced_model_ref(x, params)
    assert out.shape == (B, 1)
    assert jnp.allclose(out, ref, atol=1e-5, rtol=1e-5), "mismatch vs JAX reference"

    print("KERNEL_OK")
</pallas_src>

<mosaic_0001>
module attributes {stable_mosaic.version = 11 : i64} {
  func.func @advanced_model_kernel(%arg0: i32, %arg1: memref<8x15xf32, #tpu.memory_space<vmem>>, %arg2: memref<15x32xf32, #tpu.memory_space<vmem>>, %arg3: memref<1x32xf32, #tpu.memory_space<vmem>>, %arg4: memref<32x64xf32, #tpu.memory_space<vmem>>, %arg5: memref<1x64xf32, #tpu.memory_space<vmem>>, %arg6: memref<64x32xf32, #tpu.memory_space<vmem>>, %arg7: memref<1x32xf32, #tpu.memory_space<vmem>>, %arg8: memref<32x16xf32, #tpu.memory_space<vmem>>, %arg9: memref<1x16xf32, #tpu.memory_space<vmem>>, %arg10: memref<1x16xf32, #tpu.memory_space<vmem>>, %arg11: memref<1x1xf32, #tpu.memory_space<vmem>>, %arg12: memref<1x8xf32, #tpu.memory_space<vmem>>) attributes {dimension_semantics = [#tpu.dimension_semantics<parallel>], iteration_bounds = array<i64: 1>, scalar_prefetch = 0 : i64, scratch_operands = 0 : i64, tpu.core_type = #tpu.core_type<tc>, window_params = [{transform_indices = @transform_0, window_bounds = array<i64: 8, 15>}, {pipeline_mode = #tpu.pipeline_mode<synchronous>, transform_indices = @transform_1, window_bounds = array<i64: 15, 32>}, {pipeline_mode = #tpu.pipeline_mode<synchronous>, transform_indices = @transform_2, window_bounds = array<i64: 1, 32>}, {pipeline_mode = #tpu.pipeline_mode<synchronous>, transform_indices = @transform_3, window_bounds = array<i64: 32, 64>}, {pipeline_mode = #tpu.pipeline_mode<synchronous>, transform_indices = @transform_4, window_bounds = array<i64: 1, 64>}, {pipeline_mode = #tpu.pipeline_mode<synchronous>, transform_indices = @transform_5, window_bounds = array<i64: 64, 32>}, {pipeline_mode = #tpu.pipeline_mode<synchronous>, transform_indices = @transform_6, window_bounds = array<i64: 1, 32>}, {pipeline_mode = #tpu.pipeline_mode<synchronous>, transform_indices = @transform_7, window_bounds = array<i64: 32, 16>}, {pipeline_mode = #tpu.pipeline_mode<synchronous>, transform_indices = @transform_8, window_bounds = array<i64: 1, 16>}, {pipeline_mode = #tpu.pipeline_mode<synchronous>, transform_indices = @transform_9, window_bounds = array<i64: 1, 16>}, {pipeline_mode = #tpu.pipeline_mode<synchronous>, transform_indices = @transform_10, window_bounds = array<i64: 1, 1>}, {transform_indices = @transform_11, window_bounds = array<i64: 1, 8>}]} {
    %c0 = arith.constant 0 : index
    %c0_0 = arith.constant 0 : index
    %0 = vector.load %arg1[%c0, %c0_0] : memref<8x15xf32, #tpu.memory_space<vmem>>, vector<8x15xf32>
    %c0_1 = arith.constant 0 : index
    %c0_2 = arith.constant 0 : index
    %1 = vector.load %arg2[%c0_1, %c0_2] : memref<15x32xf32, #tpu.memory_space<vmem>>, vector<15x32xf32>
    %cst = arith.constant dense<0.000000e+00> : vector<8x32xf32>
    %2 = tpu.matmul %0, %1, %cst {dimension_numbers = #tpu.dot_dimension_numbers<[1], [0], [0], [1], [0, 0, 1, 1], [], []>} : vector<8x15xf32>, vector<15x32xf32>, vector<8x32xf32> -> vector<8x32xf32>
    %c0_3 = arith.constant 0 : index
    %c0_4 = arith.constant 0 : index
    %3 = vector.load %arg3[%c0_3, %c0_4] : memref<1x32xf32, #tpu.memory_space<vmem>>, vector<1x32xf32>
    %4 = vector.broadcast %3 : vector<1x32xf32> to vector<8x32xf32>
    %5 = arith.addf %2, %4 : vector<8x32xf32>
    %cst_5 = arith.constant 0.000000e+00 : f32
    %6 = vector.broadcast %cst_5 : f32 to vector<8x32xf32>
    %7 = arith.maximumf %5, %6 : vector<8x32xf32>
    %c0_6 = arith.constant 0 : index
    %c0_7 = arith.constant 0 : index
    %8 = vector.load %arg4[%c0_6, %c0_7] : memref<32x64xf32, #tpu.memory_space<vmem>>, vector<32x64xf32>
    %cst_8 = arith.constant dense<0.000000e+00> : vector<8x64xf32>
    %9 = tpu.matmul %7, %8, %cst_8 {dimension_numbers = #tpu.dot_dimension_numbers<[1], [0], [0], [1], [0, 0, 1, 1], [], []>} : vector<8x32xf32>, vector<32x64xf32>, vector<8x64xf32> -> vector<8x64xf32>
    %c0_9 = arith.constant 0 : index
    %c0_10 = arith.constant 0 : index
    %10 = vector.load %arg5[%c0_9, %c0_10] : memref<1x64xf32, #tpu.memory_space<vmem>>, vector<1x64xf32>
    %11 = vector.broadcast %10 : vector<1x64xf32> to vector<8x64xf32>
    %12 = arith.addf %9, %11 : vector<8x64xf32>
    %cst_11 = arith.constant 0.000000e+00 : f32
    %13 = vector.broadcast %cst_11 : f32 to vector<8x64xf32>
    %14 = arith.maximumf %12, %13 : vector<8x64xf32>
    %c0_12 = arith.constant 0 : index
    %c0_13 = arith.constant 0 : index
    %15 = vector.load %arg6[%c0_12, %c0_13] : memref<64x32xf32, #tpu.memory_space<vmem>>, vector<64x32xf32>
    %cst_14 = arith.constant dense<0.000000e+00> : vector<8x32xf32>
    %16 = tpu.matmul %14, %15, %cst_14 {dimension_numbers = #tpu.dot_dimension_numbers<[1], [0], [0], [1], [0, 0, 1, 1], [], []>} : vector<8x64xf32>, vector<64x32xf32>, vector<8x32xf32> -> vector<8x32xf32>
    %c0_15 = arith.constant 0 : index
    %c0_16 = arith.constant 0 : index
    %17 = vector.load %arg7[%c0_15, %c0_16] : memref<1x32xf32, #tpu.memory_space<vmem>>, vector<1x32xf32>
    %18 = vector.broadcast %17 : vector<1x32xf32> to vector<8x32xf32>
    %19 = arith.addf %16, %18 : vector<8x32xf32>
    %cst_17 = arith.constant 0.000000e+00 : f32
    %20 = vector.broadcast %cst_17 : f32 to vector<8x32xf32>
    %21 = arith.maximumf %19, %20 : vector<8x32xf32>
    %c0_18 = arith.constant 0 : index
    %c0_19 = arith.constant 0 : index
    %22 = vector.load %arg8[%c0_18, %c0_19] : memref<32x16xf32, #tpu.memory_space<vmem>>, vector<32x16xf32>
    %cst_20 = arith.constant dense<0.000000e+00> : vector<8x16xf32>
    %23 = tpu.matmul %21, %22, %cst_20 {dimension_numbers = #tpu.dot_dimension_numbers<[1], [0], [0], [1], [0, 0, 1, 1], [], []>} : vector<8x32xf32>, vector<32x16xf32>, vector<8x16xf32> -> vector<8x16xf32>
    %c0_21 = arith.constant 0 : index
    %c0_22 = arith.constant 0 : index
    %24 = vector.load %arg9[%c0_21, %c0_22] : memref<1x16xf32, #tpu.memory_space<vmem>>, vector<1x16xf32>
    %25 = vector.broadcast %24 : vector<1x16xf32> to vector<8x16xf32>
    %26 = arith.addf %23, %25 : vector<8x16xf32>
    %cst_23 = arith.constant 0.000000e+00 : f32
    %27 = vector.broadcast %cst_23 : f32 to vector<8x16xf32>
    %28 = arith.maximumf %26, %27 : vector<8x16xf32>
    %c0_24 = arith.constant 0 : index
    %c0_25 = arith.constant 0 : index
    %29 = vector.load %arg10[%c0_24, %c0_25] : memref<1x16xf32, #tpu.memory_space<vmem>>, vector<1x16xf32>
    %cst_26 = arith.constant dense<0.000000e+00> : vector<1x8xf32>
    %30 = tpu.matmul %29, %28, %cst_26 {dimension_numbers = #tpu.dot_dimension_numbers<[1], [1], [0], [0], [0, 0, 1, 0], [], []>} : vector<1x16xf32>, vector<8x16xf32>, vector<1x8xf32> -> vector<1x8xf32>
    %c0_27 = arith.constant 0 : index
    %c0_28 = arith.constant 0 : index
    %31 = vector.load %arg11[%c0_27, %c0_28] : memref<1x1xf32, #tpu.memory_space<vmem>>, vector<1x1xf32>
    %32 = vector.broadcast %31 : vector<1x1xf32> to vector<1x8xf32>
    %33 = arith.addf %30, %32 : vector<1x8xf32>
    %34 = arith.negf %33 : vector<1x8xf32>
    %35 = math.exp %34 : vector<1x8xf32>
    %cst_29 = arith.constant 1.000000e+00 : f32
    %36 = vector.broadcast %cst_29 : f32 to vector<1x8xf32>
    %37 = arith.addf %36, %35 : vector<1x8xf32>
    %38 = arith.divf %36, %37 : vector<1x8xf32>
    %c0_30 = arith.constant 0 : index
    %c0_31 = arith.constant 0 : index
    %39 = vector.load %arg12[%c0_30, %c0_31] : memref<1x8xf32, #tpu.memory_space<vmem>>, vector<1x8xf32>
    tpu.vector_store %arg12[%c0_30, %c0_31], %38 {strides = array<i32>} : memref<1x8xf32, #tpu.memory_space<vmem>>, vector<1x8xf32>,
    return
  }
  func.func @transform_0(%arg0: i32) -> (i32, i32) {
    %c0_i32 = arith.constant 0 : i32
    %c0_i32_0 = arith.constant 0 : i32
    return %arg0, %c0_i32 : i32, i32
  }
  func.func @transform_1(%arg0: i32) -> (i32, i32) {
    %c0_i32 = arith.constant 0 : i32
    %c0_i32_0 = arith.constant 0 : i32
    %c0_i32_1 = arith.constant 0 : i32
    return %c0_i32, %c0_i32_0 : i32, i32
  }
  func.func @transform_2(%arg0: i32) -> (i32, i32) {
    %c0_i32 = arith.constant 0 : i32
    %c0_i32_0 = arith.constant 0 : i32
    %c0_i32_1 = arith.constant 0 : i32
    return %c0_i32, %c0_i32_0 : i32, i32
  }
  func.func @transform_3(%arg0: i32) -> (i32, i32) {
    %c0_i32 = arith.constant 0 : i32
    %c0_i32_0 = arith.constant 0 : i32
    %c0_i32_1 = arith.constant 0 : i32
    return %c0_i32, %c0_i32_0 : i32, i32
  }
  func.func @transform_4(%arg0: i32) -> (i32, i32) {
    %c0_i32 = arith.constant 0 : i32
    %c0_i32_0 = arith.constant 0 : i32
    %c0_i32_1 = arith.constant 0 : i32
    return %c0_i32, %c0_i32_0 : i32, i32
  }
  func.func @transform_5(%arg0: i32) -> (i32, i32) {
    %c0_i32 = arith.constant 0 : i32
    %c0_i32_0 = arith.constant 0 : i32
    %c0_i32_1 = arith.constant 0 : i32
    return %c0_i32, %c0_i32_0 : i32, i32
  }
  func.func @transform_6(%arg0: i32) -> (i32, i32) {
    %c0_i32 = arith.constant 0 : i32
    %c0_i32_0 = arith.constant 0 : i32
    %c0_i32_1 = arith.constant 0 : i32
    return %c0_i32, %c0_i32_0 : i32, i32
  }
  func.func @transform_7(%arg0: i32) -> (i32, i32) {
    %c0_i32 = arith.constant 0 : i32
    %c0_i32_0 = arith.constant 0 : i32
    %c0_i32_1 = arith.constant 0 : i32
    return %c0_i32, %c0_i32_0 : i32, i32
  }
  func.func @transform_8(%arg0: i32) -> (i32, i32) {
    %c0_i32 = arith.constant 0 : i32
    %c0_i32_0 = arith.constant 0 : i32
    %c0_i32_1 = arith.constant 0 : i32
    return %c0_i32, %c0_i32_0 : i32, i32
  }
  func.func @transform_9(%arg0: i32) -> (i32, i32) {
    %c0_i32 = arith.constant 0 : i32
    %c0_i32_0 = arith.constant 0 : i32
    %c0_i32_1 = arith.constant 0 : i32
    return %c0_i32, %c0_i32_0 : i32, i32
  }
  func.func @transform_10(%arg0: i32) -> (i32, i32) {
    %c0_i32 = arith.constant 0 : i32
    %c0_i32_0 = arith.constant 0 : i32
    %c0_i32_1 = arith.constant 0 : i32
    return %c0_i32, %c0_i32_0 : i32, i32
  }
  func.func @transform_11(%arg0: i32) -> (i32, i32) {
    %c0_i32 = arith.constant 0 : i32
    %c0_i32_0 = arith.constant 0 : i32
    return %arg0, %c0_i32 : i32, i32
  }
}

</mosaic_0001>

<bundles_post_ra>
// kernel: tpu_custom_call.1
= control target key start
LH: loop header
LB: loop body
LE: loop exit
PB: predicated region body
PF: predicated region fallthrough
CT: control target
= control target key end

     0   :  { %s794_s0 = inlined_call_operand.vmem [shape: f32[8,15], index: 0, kind: input, shape index: {}]   ;;  %s795_s1 = inlined_call_operand.vmem [shape: f32[15,32], index: 1, kind: input, shape index: {}]   ;;  %s796_s2 = inlined_call_operand.vmem [shape: f32[1,32], index: 2, kind: input, shape index: {}]   ;;  %s797_s3 = inlined_call_operand.vmem [shape: f32[32,64], index: 3, kind: input, shape index: {}]   ;;  %s798_s4 = inlined_call_operand.vmem [shape: f32[1,64], index: 4, kind: input, shape index: {}]   ;;  %s799_s5 = inlined_call_operand.vmem [shape: f32[64,32], index: 5, kind: input, shape index: {}]   ;;  %s800_s6 = inlined_call_operand.vmem [shape: f32[1,32], index: 6, kind: input, shape index: {}]   ;;  %s801_s7 = inlined_call_operand.vmem [shape: f32[32,16], index: 7, kind: input, shape index: {}]   ;;  %s802_s8 = inlined_call_operand.vmem [shape: f32[1,16], index: 8, kind: input, shape index: {}]   ;;  %s803_s9 = inlined_call_operand.vmem [shape: f32[1,16], index: 9, kind: input, shape index: {}]   ;;  %s804_s10 = inlined_call_operand.<no memory space> [shape: f32[1,1], index: 10, kind: input, shape index: {}]   ;;  %s805_s11 = inlined_call_operand.hbm [shape: f32[1,8], index: 11, kind: output, shape index: {}]  }
   0x1   :  { %v16_v0 = vstv %s804_s10 }
   0x2   :  { %17 = vst [vmem:[#allocation2] sm:$0x1] %v16_v0 }
   0x3   :  { %v43_v1 = vld [vmem:[%s795_s1 + $0x8] sm:$0x7f]  ;;  %vm55_vm0 = vcmask 1046528   ;;  %v621_v2 = vmov 0.0   ;;  %v42_v3 = vld [vmem:[%s795_s1] sm:$0xff]  ;;  %vm622_vm1 = vmmov 0  }
   0x4   :  { %537 = vmatprep.subr.mxu0 %v621_v2  ;;  %541 = vmatprep.mubr.msk.f32.mxu0 %vm622_vm1, %v621_v2  ;;  %v133_v4 = vld [vmem:[%s797_s3 + $0x18] sm:$0xff]  ;;  %v41_v5 = vld [vmem:[%s794_s0] sm:$0xff]  ;;  %vm51_vm2 = vcmask 121856  }
   0x5   :  { %538 = vmatpush3.msk.msra.mxu0 %vm55_vm0, %v43_v1  ;;  %544 = vmatprep.subr.mxu1 %v621_v2 }
   0x6   :  { %18 = vsyncpa [#allocation4], 0  ;;  %539 = vmatprep.subr.mxu0 %v621_v2  ;;  %545 = vmatpush3.msra.mxu1 %v133_v4  ;;  %v132_v6 = vld [vmem:[%s797_s3 + $0x10] sm:$0xff]  ;;  %v131_v7 = vld [vmem:[%s797_s3 + $0x8] sm:$0xff]  ;;  %vm141_vm3 = vcmask 261120   ;;  %vm231_vm4 = vcmask 523264   ;;  %v398_v44 = vlaneseq }
   0x7   :  { %540 = vmatpush3.msra.mxu0 %v42_v3  ;;  %546 = vmatprep.subr.mxu1 %v621_v2  ;;  %v130_v8 = vld [vmem:[%s797_s3] sm:$0xff]  ;;  %v223_v9 = vld [vmem:[%s799_s5 + $0x38] sm:$0xff]  ;;  %v222_v10 = vld [vmem:[%s799_s5 + $0x30] sm:$0xff]  ;;  %v623_v37 = vmov 0   ;;  %vm402_vm5 = vcmask 130048   ;;  %vm485_vm6 = vcmask 57344  }
   0x8   :  { %542 = vmatmul.mubr.msk.f32.vlgmr.msra.gmra.mxu0 %vm51_vm2, %v41_v5  ;;  %552 = vmatprep.mubr.msk.f32.mxu1 %vm622_vm1, %v621_v2  ;;  %v221_v11 = vld [vmem:[%s799_s5 + $0x28] sm:$0xff]  ;;  %v220_v12 = vld [vmem:[%s799_s5 + $0x20] sm:$0xff]  ;;  %v219_v13 = vld [vmem:[%s799_s5 + $0x18] sm:$0xff]  ;;  %v399_v45 = vshrl.u32 %v398_v44, 7 }
   0x9   :  { %555 = vmatprep.subr.mxu0 %v621_v2  ;;  %571 = vmatprep.mubr.msk.f32.mxu0 %vm622_vm1, %v621_v2  ;;  %v501_v14 = vld [vmem:[%s796_s2] ss:$0 sm:$0xff]  ;;  %v218_v19 = vld [vmem:[%s799_s5 + $0x10] sm:$0xff]  ;;  %v217_v20 = vld [vmem:[%s799_s5 + $0x8] sm:$0xff] }
   0xa   :  { %547 = vmatpush3.msra.mxu1 %v132_v6  ;;  %556 = vmatpush3.msra.mxu0 %v223_v9  ;;  %v216_v21 = vld [vmem:[%s799_s5] sm:$0xff]  ;;  %v309_v22 = vld [vmem:[%s801_s7 + $0x18] sm:$0xff]  ;;  %v308_v28 = vld [vmem:[%s801_s7 + $0x10] sm:$0xff]  ;;  %v400_v46 = vsub.s32 0, %v399_v45 }
   0xb   :  { %548 = vmatprep.subr.mxu1 %v621_v2  ;;  %557 = vmatprep.subr.mxu0 %v621_v2  ;;  %v504_v23 = vld [vmem:[%s798_s4] ss:$0 sm:$0xff]  ;;  %v307_v29 = vld [vmem:[%s801_s7 + $0x8] sm:$0xff] }
   0xc   :  { %549 = vmatpush3.msra.mxu1 %v131_v7  ;;  %558 = vmatpush3.msra.mxu0 %v222_v10  ;;  %v306_v30 = vld [vmem:[%s801_s7] sm:$0xff] }
   0xd   :  { %550 = vmatprep.subr.mxu1 %v621_v2  ;;  %559 = vmatprep.subr.mxu0 %v621_v2  ;;  %v506_v31 = vld [vmem:[%s800_s6] ss:$0 sm:$0xff] }
   0xe   :  { %551 = vmatpush3.msra.mxu1 %v130_v8  ;;  %560 = vmatpush3.msra.mxu0 %v221_v11  ;;  %v392_v36 = vld [vmem:[#allocation2] sm:$0x1] }
   0xf   :  { %574 = vmatprep.subr.mxu1 %v621_v2  ;;  %561 = vmatprep.subr.mxu0 %v621_v2  ;;  %v508_v38 = vld [vmem:[%s802_s8] ss:$0 sm:$0xff]  ;;  %s624_s8 = smov [#allocation3]  }
  0x10   :  { %562 = vmatpush3.msra.mxu0 %v220_v12  ;;  %594 = vset.pattern.permute.xlu0 %v623_v37  ;;  %v391_v43 = vld [vmem:[%s803_s9] sm:$0x1]  ;;  %s493_s3 = sshll.u32 %s624_s8, 4  ;;  %s494_s3 = int_to_ptr.vmem [resolvable:$true] %s493_s3 }
  0x11   :  { %563 = vmatprep.subr.mxu0 %v621_v2  ;;  %395 = vperm.xlu0 %594, %v392_v36   ;;  %s599_s9 = scalar_lea.vmem %s494_s3, 16  ;;  %s603_s17 = scalar_lea.vmem %s494_s3, 32 }
  0x12   :  { %564 = vmatpush3.msra.mxu0 %v219_v13  ;;  %p600_p0 = scmp.ne.s32.totalorder %s494_s3, %s599_s9  ;;  %p604_p1 = scmp.lt.s32.totalorder %s494_s3, %s494_s3 }
  0x13   :  { %565 = vmatprep.subr.mxu0 %v621_v2  ;;  %p605_p2 = scmp.lt.s32.totalorder %s603_s17, %s599_s9 }
  0x14   :  { %566 = vmatpush3.msra.mxu0 %v218_v19 }
  0x15   :  { %567 = vmatprep.subr.mxu0 %v621_v2  ;;  %p606_p3 = por %p605_p2, %p604_p1 }
  0x16   :  { %568 = vmatpush3.msra.mxu0 %v217_v20 }
  0x17   :  { %569 = vmatprep.subr.mxu0 %v621_v2  ;;  %p607_p4 = pnand %p606_p3, %p600_p0 }
  0x18   :  { %570 = vmatpush3.msra.mxu0 %v216_v21 }
  0x8c   :  { %v396_v47 = vpop.permute.xlu0 %395 }
  0x8d   :  { %v401_v48 = vrot.slane %v396_v47, %v400_v46 }
  0xc8   :  { %v125_v15 = vpop.f32.mrf.mxu0 }
  0xc9   :  { %v126_v16 = vadd.f32 %v501_v14, %v125_v15 }
  0xca   :  { %v543_v17 = vpop.f32.mrf.mxu0 }
  0xcb   :  { %v129_v18 = vmax.f32 %v126_v16, 0.0 }
  0xcd   :  { %553 = vmatmul.mubr.msk.f32.vlgmr.msra.gmra.mxu1 %vm141_vm3, %v129_v18 }
  0xce   :  { %582 = vmatprep.mubr.msk.f32.mxu1 %vm622_vm1, %v621_v2  ;;  %575 = vmatpush3.msra.mxu1 %v309_v22 }
  0xcf   :  { %576 = vmatprep.subr.mxu1 %v621_v2 }
  0xd0   :  { %577 = vmatpush3.msra.mxu1 %v308_v28 }
  0xd1   :  { %578 = vmatprep.subr.mxu1 %v621_v2 }
  0xd2   :  { %579 = vmatpush3.msra.mxu1 %v307_v29 }
  0xd3   :  { %580 = vmatprep.subr.mxu1 %v621_v2 }
  0xd4   :  { %581 = vmatpush3.msra.mxu1 %v306_v30 }
  0xd5   :  { %585 = vmatprep.subr.mxu1 %v621_v2 }
 0x18d   :  { %v211_v24 = vpop.f32.mrf.mxu1 }
 0x18e   :  { %v212_v25 = vadd.f32 %v504_v23, %v211_v24 }
 0x18f   :  { %v554_v26 = vpop.f32.mrf.mxu1 }
 0x190   :  { %v215_v27 = vmax.f32 %v212_v25, 0.0 }
 0x192   :  { %572 = vmatmul.mubr.msk.f32.vlgmr.msra.gmra.mxu0 %vm231_vm4, %v215_v27 }
 0x252   :  { %v301_v32 = vpop.f32.mrf.mxu0 }
 0x253   :  { %v302_v33 = vadd.f32 %v506_v31, %v301_v32 }
 0x254   :  { %v573_v34 = vpop.f32.mrf.mxu0 }
 0x255   :  { %v305_v35 = vmax.f32 %v302_v33, 0.0 }
 0x257   :  { %583 = vmatmul.mubr.msk.f32.vlgmr.msra.gmra.mxu1 %vm141_vm3, %v305_v35 }
 0x258   :  { %587 = vmatprep.mubr.msk.f32.mxu1 %vm622_vm1, %v621_v2 }
 0x317   :  { %v386_v39 = vpop.f32.mrf.mxu1 }
 0x318   :  { %v387_v40 = vadd.f32 %v508_v38, %v386_v39 }
 0x319   :  { %v584_v41 = vpop.f32.mrf.mxu1 }
 0x31a   :  { %v390_v42 = vmax.f32 %v387_v40, 0.0 }
 0x31c   :  { %586 = vmatpush3.xpose.msk.msra.mxu1 %vm402_vm5, %v390_v42 }
 0x31f   :  { %588 = vmatmul.mubr.msk.f32.vlgmr.msra.gmra.mxu1 %vm402_vm5, %v391_v43 }
 0x3df   :  { %v475_v49 = vpop.f32.mrf.mxu1 }
 0x3e0   :  { %v476_v50 = vadd.f32 %v475_v49, %v401_v48 }
 0x3e1   :  { %v589_v51 = vpop.f32.mrf.mxu1 }
 0x3e2   :  { %v512_v52 = vmul.f32 -1.442695, %v476_v50 }
 0x3e4   :  { %595 = vpow2.f32 %v512_v52 }
 0x3f1   :  { %v596_v53 = vpop.eup %595 }
 0x3f2   :  { %v482_v54 = vadd.f32 1.0, %v596_v53 }
 0x3f4   :  { %597 = vrcp.f32 %v482_v54 }
 0x401   :  { %v598_v55 = vpop.eup %597 }
 0x402   :  { %486 = vst.msk [vmem:[#allocation3] sm:$0x1] %vm485_vm6, %v598_v55 }
 0x403   :  { %610 = shalt.err (!%p607_p4)
}
 0x404   :  { %496 = dma.vmem_to_hbm [thread:$0]  %s494_s3, 16, %s805_s11, [#allocation4]  }
 0x405   :  { %619 = dma.done.wait [#allocation4], 16  }
 0x406   :  { %620 = vsyncadd [#allocation4], 4294967280 }
 0x407   :  { %500 = vsyncpa [#allocation4], 1 }

</bundles_post_ra>
